<compile_context>
chip_gen: v6e
topology: v6e:2x2x1
jax: 0.10.0
libtpu: 0.0.40
codegen_flags: <defaults>
</compile_context>

<pallas_src>
import functools

import jax
import jax.numpy as jnp
from jax.experimental import pallas as pl
from jax.experimental.pallas import tpu as pltpu


def _round_up(n, m):
    return ((n + m - 1) // m) * m


def _variational_train_kernel(x_ref, w_ref, b_ref, noise_ref, out_ref, *, d_out_p):
    # One fused matmul: [tb, D_in] @ [D_in, 2*D_out_p], f32 accumulation on MXU.
    y = jnp.dot(x_ref[...], w_ref[...], preferred_element_type=jnp.float32) + b_ref[...]
    mean = jnp.tanh(y[:, :d_out_p])                       # mean branch (Tanh)
    std = jnp.logaddexp(y[:, d_out_p:], 0.0)              # std branch (Softplus, stable)
    out_ref[...] = (mean + noise_ref[...] * std).astype(out_ref.dtype)


def _variational_eval_kernel(x_ref, w_ref, b_ref, out_ref):
    y = jnp.dot(x_ref[...], w_ref[...], preferred_element_type=jnp.float32) + b_ref[...]
    out_ref[...] = jnp.tanh(y).astype(out_ref.dtype)


def variational_layer(x, w_mean, b_mean, w_std, b_std, noise=None,
                      training=True, tb=None, compute_dtype=None):
    """x: [B, D_in]; w_*: [D_in, D_out]; b_*: [1, D_out]; noise: [B, D_out].

    compute_dtype: optional dtype (e.g. jnp.bfloat16) for the matmul operands
    (x, weights). Accumulation and all elementwise math stay in float32.
    """
    B, D_in = x.shape
    D_out = w_mean.shape[1]
    out_dtype = x.dtype

    # Lane-dense N: pad D_out to a multiple of 128.
    D_out_p = _round_up(D_out, 128)

    # Large batch tile: multiple of 8 sublanes, up to 256 (MXU M tile).
    if tb is None:
        tb = min(256, _round_up(B, 8))
    tb = max(8, _round_up(tb, 8))
    B_p = _round_up(B, tb)

    if compute_dtype is not None:
        x = x.astype(compute_dtype)
        w_mean = w_mean.astype(compute_dtype)
        w_std = w_std.astype(compute_dtype)

    def pad2(a, rows, cols):
        pr, pc = rows - a.shape[0], cols - a.shape[1]
        return jnp.pad(a, ((0, pr), (0, pc))) if (pr or pc) else a

    x_p = pad2(x, B_p, D_in)
    wm_p = pad2(w_mean, D_in, D_out_p)
    bm_p = pad2(b_mean.astype(jnp.float32), 1, D_out_p)

    grid = (B_p // tb,)
    x_spec = pl.BlockSpec((tb, D_in), lambda i: (i, 0))
    y_spec = pl.BlockSpec((tb, D_out_p), lambda i: (i, 0))

    # TODO(synk): for very large D_in*D_out (v7x 64 MiB VMEM), tile the weight
    # N/K dims with an f32 accumulator instead of keeping full weights resident.

    if training:
        assert noise is not None, "training mode requires reparameterization noise"
        ws_p = pad2(w_std, D_in, D_out_p)
        bs_p = pad2(b_std.astype(jnp.float32), 1, D_out_p)
        w_fused = jnp.concatenate([wm_p, ws_p], axis=1)   # [D_in, 2*D_out_p]
        b_fused = jnp.concatenate([bm_p, bs_p], axis=1)   # [1, 2*D_out_p]
        noise_p = pad2(noise.astype(jnp.float32), B_p, D_out_p)

        out = pl.pallas_call(
            functools.partial(_variational_train_kernel, d_out_p=D_out_p),
            out_shape=jax.ShapeDtypeStruct((B_p, D_out_p), out_dtype),
            grid_spec=pltpu.PrefetchScalarGridSpec(
                num_scalar_prefetch=0,
                grid=grid,
                in_specs=[
                    x_spec,
                    pl.BlockSpec((D_in, 2 * D_out_p), lambda i: (0, 0)),  # fused weights
                    pl.BlockSpec((1, 2 * D_out_p), lambda i: (0, 0)),     # fused biases
                    y_spec,                                               # noise
                ],
                out_specs=y_spec,
            ),
            compiler_params=pltpu.CompilerParams(
                dimension_semantics=("parallel",)),
        )(x_p, w_fused, b_fused, noise_p)
    else:
        out = pl.pallas_call(
            _variational_eval_kernel,
            out_shape=jax.ShapeDtypeStruct((B_p, D_out_p), out_dtype),
            grid_spec=pltpu.PrefetchScalarGridSpec(
                num_scalar_prefetch=0,
                grid=grid,
                in_specs=[
                    x_spec,
                    pl.BlockSpec((D_in, D_out_p), lambda i: (0, 0)),
                    pl.BlockSpec((1, D_out_p), lambda i: (0, 0)),
                ],
                out_specs=y_spec,
            ),
            compiler_params=pltpu.CompilerParams(
                dimension_semantics=("parallel",)),
        )(x_p, wm_p, bm_p)

    return out[:B, :D_out]


def _reference(x, w_mean, b_mean, w_std, b_std, noise, training=True):
    mean = jnp.tanh(x @ w_mean + b_mean)
    if training:
        std = jnp.logaddexp(x @ w_std + b_std, 0.0)
        mean = mean + noise * std
    return mean


if __name__ == "__main__":
    key = jax.random.PRNGKey(0)
    B, inputSize, outputSize = 16, 32, 16

    k_x, k_wm, k_bm, k_ws, k_bs, k_n = jax.random.split(key, 6)

    # Deterministic parameter init (matches nn.Linear's U(-1/sqrt(in), 1/sqrt(in)) range).
    bound = 1.0 / jnp.sqrt(jnp.float32(inputSize))
    w_mean = jax.random.uniform(k_wm, (inputSize, outputSize), jnp.float32, -bound, bound)
    b_mean = jax.random.uniform(k_bm, (1, outputSize), jnp.float32, -bound, bound)
    w_std = jax.random.uniform(k_ws, (inputSize, outputSize), jnp.float32, -bound, bound)
    b_std = jax.random.uniform(k_bs, (1, outputSize), jnp.float32, -bound, bound)

    x = jax.random.normal(k_x, (B, inputSize), jnp.float32)
    # torch.randn(std.size()) -> deterministic Gaussian noise generated in JAX and fed in.
    noise = jax.random.normal(k_n, (B, outputSize), jnp.float32)

    ref_train = _reference(x, w_mean, b_mean, w_std, b_std, noise, training=True)
    ref_eval = _reference(x, w_mean, b_mean, w_std, b_std, noise, training=False)

    # Training path (f32 operands, tight check).
    out = jax.block_until_ready(
        variational_layer(x, w_mean, b_mean, w_std, b_std, noise, training=True)
    )
    assert out.shape == (B, outputSize)
    assert jnp.allclose(out, ref_train, atol=1e-5, rtol=1e-5), "mismatch vs reference (train)"

    # Eval path (no reparameterization noise).
    out_eval = jax.block_until_ready(
        variational_layer(x, w_mean, b_mean, w_std, b_std, training=False)
    )
    assert jnp.allclose(out_eval, ref_eval, atol=1e-5, rtol=1e-5), "mismatch vs reference (eval)"

    # Exercise the bf16-operand path (MXU peak on v6e/v7x); loose tolerance.
    out_bf16 = jax.block_until_ready(
        variational_layer(x, w_mean, b_mean, w_std, b_std, noise,
                          training=True, compute_dtype=jnp.bfloat16)
    )
    assert jnp.allclose(out_bf16, ref_train, atol=1e-1, rtol=1e-1), "mismatch vs reference (bf16)"

    print("KERNEL_OK")
</pallas_src>

<mosaic_0001>
module attributes {stable_mosaic.version = 11 : i64} {
  func.func @_variational_train_kernel(%arg0: i32, %arg1: memref<16x32xf32, #tpu.memory_space<vmem>>, %arg2: memref<32x256xf32, #tpu.memory_space<vmem>>, %arg3: memref<1x256xf32, #tpu.memory_space<vmem>>, %arg4: memref<16x128xf32, #tpu.memory_space<vmem>>, %arg5: memref<16x128xf32, #tpu.memory_space<vmem>>) attributes {dimension_semantics = [#tpu.dimension_semantics<parallel>], iteration_bounds = array<i64: 1>, scalar_prefetch = 0 : i64, scratch_operands = 0 : i64, tpu.core_type = #tpu.core_type<tc>, window_params = [{transform_indices = @transform_0, window_bounds = array<i64: 16, 32>}, {pipeline_mode = #tpu.pipeline_mode<synchronous>, transform_indices = @transform_1, window_bounds = array<i64: 32, 256>}, {pipeline_mode = #tpu.pipeline_mode<synchronous>, transform_indices = @transform_2, window_bounds = array<i64: 1, 256>}, {transform_indices = @transform_3, window_bounds = array<i64: 16, 128>}, {transform_indices = @transform_4, window_bounds = array<i64: 16, 128>}]} {
    %c0 = arith.constant 0 : index
    %c0_0 = arith.constant 0 : index
    %0 = vector.load %arg1[%c0, %c0_0] : memref<16x32xf32, #tpu.memory_space<vmem>>, vector<16x32xf32>
    %c0_1 = arith.constant 0 : index
    %c0_2 = arith.constant 0 : index
    %1 = vector.load %arg2[%c0_1, %c0_2] : memref<32x256xf32, #tpu.memory_space<vmem>>, vector<32x256xf32>
    %cst = arith.constant dense<0.000000e+00> : vector<16x256xf32>
    %2 = tpu.matmul %0, %1, %cst {dimension_numbers = #tpu.dot_dimension_numbers<[1], [0], [0], [1], [0, 0, 1, 1], [], []>} : vector<16x32xf32>, vector<32x256xf32>, vector<16x256xf32> -> vector<16x256xf32>
    %c0_3 = arith.constant 0 : index
    %c0_4 = arith.constant 0 : index
    %3 = vector.load %arg3[%c0_3, %c0_4] : memref<1x256xf32, #tpu.memory_space<vmem>>, vector<1x256xf32>
    %4 = vector.broadcast %3 : vector<1x256xf32> to vector<16x256xf32>
    %5 = arith.addf %2, %4 : vector<16x256xf32>
    %6 = vector.extract_strided_slice %5 {offsets = [0, 0], sizes = [16, 128], strides = [1, 1]} : vector<16x256xf32> to vector<16x128xf32>
    %7 = math.tanh %6 : vector<16x128xf32>
    %8 = vector.extract_strided_slice %5 {offsets = [0, 128], sizes = [16, 128], strides = [1, 1]} : vector<16x256xf32> to vector<16x128xf32>
    %cst_5 = arith.constant 0.000000e+00 : f32
    %9 = vector.broadcast %cst_5 : f32 to vector<16x128xf32>
    %10 = arith.maximumf %8, %9 : vector<16x128xf32>
    %11 = vector.broadcast %cst_5 : f32 to vector<16x128xf32>
    %12 = arith.subf %8, %11 : vector<16x128xf32>
    %13 = arith.cmpf one, %12, %12 : vector<16x128xf32>
    %14 = vector.broadcast %cst_5 : f32 to vector<16x128xf32>
    %15 = arith.addf %8, %14 : vector<16x128xf32>
    %16 = math.absf %12 : vector<16x128xf32>
    %cst_6 = arith.constant 0.000000e+00 : f32
    %17 = vector.broadcast %cst_6 : f32 to vector<16x128xf32>
    %18 = arith.subf %17, %16 : vector<16x128xf32>
    %19 = math.exp %18 : vector<16x128xf32>
    %20 = math.log1p %19 : vector<16x128xf32>
    %21 = arith.addf %10, %20 : vector<16x128xf32>
    %22 = arith.select %13, %15, %21 : vector<16x128xi1>, vector<16x128xf32>
    %c0_7 = arith.constant 0 : index
    %c0_8 = arith.constant 0 : index
    %23 = vector.load %arg4[%c0_7, %c0_8] : memref<16x128xf32, #tpu.memory_space<vmem>>, vector<16x128xf32>
    %24 = arith.mulf %23, %22 : vector<16x128xf32>
    %25 = arith.addf %7, %24 : vector<16x128xf32>
    %c0_9 = arith.constant 0 : index
    %c0_10 = arith.constant 0 : index
    %26 = vector.load %arg5[%c0_9, %c0_10] : memref<16x128xf32, #tpu.memory_space<vmem>>, vector<16x128xf32>
    tpu.vector_store %arg5[%c0_9, %c0_10], %25 {strides = array<i32>} : memref<16x128xf32, #tpu.memory_space<vmem>>, vector<16x128xf32>,
    return
  }
  func.func @transform_0(%arg0: i32) -> (i32, i32) {
    %c0_i32 = arith.constant 0 : i32
    %c0_i32_0 = arith.constant 0 : i32
    return %arg0, %c0_i32 : i32, i32
  }
  func.func @transform_1(%arg0: i32) -> (i32, i32) {
    %c0_i32 = arith.constant 0 : i32
    %c0_i32_0 = arith.constant 0 : i32
    %c0_i32_1 = arith.constant 0 : i32
    return %c0_i32, %c0_i32_0 : i32, i32
  }
  func.func @transform_2(%arg0: i32) -> (i32, i32) {
    %c0_i32 = arith.constant 0 : i32
    %c0_i32_0 = arith.constant 0 : i32
    %c0_i32_1 = arith.constant 0 : i32
    return %c0_i32, %c0_i32_0 : i32, i32
  }
  func.func @transform_3(%arg0: i32) -> (i32, i32) {
    %c0_i32 = arith.constant 0 : i32
    %c0_i32_0 = arith.constant 0 : i32
    return %arg0, %c0_i32 : i32, i32
  }
  func.func @transform_4(%arg0: i32) -> (i32, i32) {
    %c0_i32 = arith.constant 0 : i32
    %c0_i32_0 = arith.constant 0 : i32
    return %arg0, %c0_i32 : i32, i32
  }
}

</mosaic_0001>

<bundles_post_ra>
// kernel: tpu_custom_call.1
= control target key start
LH: loop header
LB: loop body
LE: loop exit
PB: predicated region body
PF: predicated region fallthrough
CT: control target
= control target key end

     0   :  { %9 = vsyncpa [#allocation3], 0  ;;  %s404_s0 = inlined_call_operand.hbm [shape: f32[16,32], index: 0, kind: input, shape index: {}]   ;;  %s405_s1 = inlined_call_operand.hbm [shape: f32[32,256], index: 1, kind: input, shape index: {}]   ;;  %s406_s2 = inlined_call_operand.vmem [shape: f32[1,256], index: 2, kind: input, shape index: {}]   ;;  %s407_s3 = inlined_call_operand.hbm [shape: f32[16,128], index: 3, kind: input, shape index: {}]   ;;  %s408_s4 = inlined_call_operand.hbm [shape: f32[16,128], index: 4, kind: output, shape index: {}]  }
   0x1   :  { %10 = vsyncpa [#allocation6], 0 }
   0x2   :  { %11 = vsyncpa [#allocation4], 0  ;;  %s346_s15 = smov [#allocation5]  }
   0x3   :  { %s29_s16 = sshll.u32 %s346_s15, 4  ;;  %s30_s16 = int_to_ptr.vmem [resolvable:$true] %s29_s16 }
   0x4   :  { %s268_s17 = scalar_lea.vmem %s30_s16, 1024  ;;  %p273_p1 = scmp.lt.s32.totalorder %s30_s16, %s30_s16 }
   0x5   :  { %p269_p0 = scmp.ne.s32.totalorder %s30_s16, %s268_s17  ;;  %p274_p2 = scmp.lt.s32.totalorder %s268_s17, %s268_s17 }
   0x7   :  { %p275_p3 = por %p274_p2, %p273_p1 }
   0x9   :  { %p276_p4 = pnand %p275_p3, %p269_p0 }
   0xb   :  { %279 = shalt.err (!%p276_p4)
}
   0xc   :  { %s347_s18 = smov 256   ;;  %s348_s19 = smov 16  }
   0xd   :  { %35 = dma.hbm_to_vmem [thread:$0]  %s405_s1, 1024, %s30_s16, [#allocation6], %s347_s18, %s347_s18, %s348_s19  }
   0xe   :  { %s349_s22 = smov [#allocation2]  }
   0xf   :  { %s17_s23 = sshll.u32 %s349_s22, 4  ;;  %s18_s23 = int_to_ptr.vmem [resolvable:$true] %s17_s23 }
  0x10   :  { %s288_s24 = scalar_lea.vmem %s18_s23, 256  ;;  %p293_p6 = scmp.lt.s32.totalorder %s18_s23, %s18_s23 }
  0x11   :  { %p289_p5 = scmp.ne.s32.totalorder %s18_s23, %s288_s24  ;;  %p294_p7 = scmp.lt.s32.totalorder %s288_s24, %s288_s24 }
  0x13   :  { %p295_p8 = por %p294_p7, %p293_p6 }
  0x15   :  { %p296_p9 = pnand %p295_p8, %p289_p5 }
  0x17   :  { %299 = shalt.err (!%p296_p9)
}
  0x18   :  { %s350_s25 = smov 128   ;;  %s351_s26 = smov 8  }
  0x19   :  { %23 = dma.hbm_to_vmem [thread:$0]  %s404_s0, 256, %s18_s23, [#allocation3], %s350_s25, %s350_s25, %s351_s26  }
  0x1a   :  { %s352_s1 = smov [#allocation7]  }
  0x1b   :  { %s43_s29 = sshll.u32 %s352_s1, 4  ;;  %s44_s29 = int_to_ptr.vmem [resolvable:$true] %s43_s29 }
  0x1c   :  { %s308_s30 = scalar_lea.vmem %s44_s29, 256  ;;  %p313_p11 = scmp.lt.s32.totalorder %s44_s29, %s44_s29 }
  0x1d   :  { %p309_p10 = scmp.ne.s32.totalorder %s44_s29, %s308_s30  ;;  %p314_p12 = scmp.lt.s32.totalorder %s308_s30, %s308_s30 }
  0x1f   :  { %p315_p13 = por %p314_p12, %p313_p11 }
  0x21   :  { %p316_p0 = pnand %p315_p13, %p309_p10 }
  0x23   :  { %319 = shalt.err (!%p316_p0)
}
  0x24   :  { %49 = dma.hbm_to_vmem [thread:$0]  %s407_s3, 256, %s44_s29, [#allocation6], %s350_s25, %s350_s25, %s351_s26  }
  0x25   :  { %340 = dma.done.wait [#allocation3], 256  }
  0x26   :  { %341 = vsyncadd [#allocation3], 4294967040 }
  0x27   :  { %342 = dma.done.wait [#allocation6], 1280  }
  0x28   :  { %343 = vsyncadd [#allocation6], 4294966016  ;;  %v353_v0 = vmov 0.0   ;;  %v68_v1 = vld [vmem:[#allocation5 + $0x38] sm:$0xff]  ;;  %v67_v2 = vld [vmem:[#allocation5 + $0x30] sm:$0xff]  ;;  %vm81_vm0 = vcmask 261120   ;;  %v71_v11 = vlaneseq }
  0x29   :  { %152 = vmatprep.mubr.f32.mxu0 %v353_v0  ;;  %158 = vmatprep.mubr.f32.mxu1 %v353_v0  ;;  %v66_v3 = vld [vmem:[#allocation5 + $0x28] sm:$0xff]  ;;  %v65_v4 = vld [vmem:[#allocation5 + $0x20] sm:$0xff]  ;;  %v64_v5 = vld [vmem:[#allocation5 + $0x18] sm:$0xff] }
  0x2a   :  { %112 = vmatprep.subr.mxu0 %v68_v1  ;;  %231 = vmatprep.subr.mxu1 %v68_v1  ;;  %v63_v6 = vld [vmem:[#allocation5 + $0x10] sm:$0xff]  ;;  %v62_v7 = vld [vmem:[#allocation5 + $0x8] sm:$0xff]  ;;  %v61_v8 = vld [vmem:[#allocation5] sm:$0xff]  ;;  %v72_v12 = vshrl.u32 %v71_v11, 7 }
  0x2b   :  { %113 = vmatpush1.msra.mxu0 %v67_v2  ;;  %235 = vmatpush1.msra.mxu1 %v67_v2  ;;  %v59_v9 = vld [vmem:[#allocation2] sm:$0xff]  ;;  %v60_v10 = vld [vmem:[#allocation2 + $0x8] sm:$0xff]  ;;  %v203_v53 = vld [vmem:[#allocation7] sm:$0xff] }
  0x2c   :  { %114 = vmatprep.subr.mxu0 %v66_v3  ;;  %232 = vmatprep.subr.mxu1 %v66_v3  ;;  %v77_v13 = vsub.s32 1, %v72_v12  ;;  %v69_v14 = vld [vmem:[%s406_s2] sm:$0x3]  ;;  %v73_v28 = vsub.s32 0, %v72_v12  ;;  %v204_v55 = vld [vmem:[#allocation7 + $0x8] sm:$0xff]  ;;  %s354_s2 = smov [#allocation8]  }
  0x2d   :  { %115 = vmatpush1.msra.mxu0 %v65_v4  ;;  %236 = vmatpush1.msra.mxu1 %v65_v4  ;;  %s216_s7 = sshll.u32 %s354_s2, 4  ;;  %s217_s7 = int_to_ptr.vmem [resolvable:$true] %s216_s7 }
  0x2e   :  { %116 = vmatprep.subr.mxu0 %v64_v5  ;;  %233 = vmatprep.subr.mxu1 %v64_v5  ;;  %v78_v15 = vrot.slane %v69_v14, %v77_v13  ;;  %v74_v33 = vrot.slane %v69_v14, %v73_v28  ;;  %s320_s8 = scalar_lea.vmem %s217_s7, 256  ;;  %p325_p2 = scmp.lt.s32.totalorder %s217_s7, %s217_s7 }
  0x2f   :  { %117 = vmatpush1.msra.mxu0 %v63_v6  ;;  %237 = vmatpush1.msra.mxu1 %v63_v6  ;;  %p321_p1 = scmp.ne.s32.totalorder %s217_s7, %s320_s8  ;;  %p326_p3 = scmp.lt.s32.totalorder %s320_s8, %s320_s8 }
  0x30   :  { %118 = vmatprep.subr.mxu0 %v62_v7  ;;  %234 = vmatprep.subr.mxu1 %v62_v7 }
  0x31   :  { %119 = vmatpush1.msra.mxu0 %v61_v8  ;;  %238 = vmatpush1.msra.mxu1 %v61_v8  ;;  %p327_p4 = por %p326_p3, %p325_p2 }
  0x32   :  { %229 = vmatmul.mubr.msk.f32.vlgmr.msra.gmra.mxu0 %vm81_vm0, %v59_v9  ;;  %230 = vmatmul.mubr.msk.f32.vlgmr.msra.gmra.mxu1 %vm81_vm0, %v60_v10 }
  0x33   :  { %p328_p5 = pnand %p327_p4, %p321_p1 }
  0xf2   :  { %v154_v16 = vpop.f32.mrf.mxu0  ;;  %v160_v17 = vpop.f32.mrf.mxu1 }
  0xf3   :  { %v155_v34 = vadd.f32 %v154_v16, %v74_v33  ;;  %v161_v35 = vadd.f32 %v160_v17, %v74_v33 }
  0xf4   :  { %v156_v18 = vpop.f32.mrf.mxu0  ;;  %v162_v19 = vpop.f32.mrf.mxu1 }
  0xf5   :  { %v157_v20 = vadd.f32 %v156_v18, %v78_v15  ;;  %v163_v21 = vadd.f32 %v162_v19, %v78_v15 }
  0xf7   :  { %v173_v22 = vand.u32 2147483647, %v157_v20  ;;  %v174_v23 = vand.u32 2147483647, %v163_v21  ;;  %v167_v46 = vmax.f32 %v157_v20, 0.0  ;;  %v168_v50 = vmax.f32 %v163_v21, 0.0 }
  0xf8   :  { %vm169_vm3 = vcmp.ne.f32.partialorder %v157_v20, %v157_v20  ;;  %vm170_vm4 = vcmp.ne.f32.partialorder %v163_v21, %v163_v21 }
  0xf9   :  { %v175_v24 = vsub.f32 0.0, %v173_v22  ;;  %v176_v25 = vsub.f32 0.0, %v174_v23 }
  0xfb   :  { %v177_v26 = vmul.f32 1.442695, %v175_v24  ;;  %v179_v27 = vmul.f32 1.442695, %v176_v25 }
  0xfd   :  { %248 = vpow2.f32 %v177_v26 }
  0xfe   :  { %250 = vpow2.f32 %v179_v27 }
 0x10a   :  { %v249_v29 = vpop.eup %248 }
 0x10b   :  { %v251_v30 = vpop.eup %250  ;;  %v181_v31 = vadd.f32 1.0, %v249_v29  ;;  %v184_v36 = vmul.f32 -0.5, %v249_v29  ;;  %v187_v39 = vand.u32 2147483647, %v249_v29 }
 0x10c   :  { %v190_v32 = vadd.f32 1.0, %v251_v30  ;;  %v193_v37 = vmul.f32 -0.5, %v251_v30  ;;  %v196_v41 = vand.u32 2147483647, %v251_v30 }
 0x10d   :  { %252 = vlog2.f32 %v181_v31  ;;  %v185_v38 = vadd.f32 1.0, %v184_v36  ;;  %vm188_vm1 = vcmp.lt.f32.partialorder %v187_v39, 0.0004427343 }
 0x10e   :  { %254 = vlog2.f32 %v190_v32  ;;  %v194_v40 = vadd.f32 1.0, %v193_v37  ;;  %vm197_vm2 = vcmp.lt.f32.partialorder %v196_v41, 0.0004427343 }
 0x10f   :  { %256 = vtanh.f32 %v155_v34  ;;  %v186_v45 = vmul.f32 %v249_v29, %v185_v38 }
 0x110   :  { %258 = vtanh.f32 %v161_v35  ;;  %v195_v48 = vmul.f32 %v251_v30, %v194_v40 }
 0x11a   :  { %v253_v42 = vpop.eup %252 }
 0x11b   :  { %v255_v43 = vpop.eup %254  ;;  %v183_v44 = vmul.f32 0.6931472, %v253_v42 }
 0x11c   :  { %v192_v47 = vmul.f32 0.6931472, %v255_v43  ;;  %v257_v59 = vpop.eup %256 }
 0x11d   :  { %v189_v49 = vsel %vm188_vm1, %v186_v45, %v183_v44  ;;  %v259_v61 = vpop.eup %258 }
 0x11e   :  { %v199_v51 = vadd.f32 %v189_v49, %v167_v46  ;;  %v198_v52 = vsel %vm197_vm2, %v195_v48, %v192_v47 }
 0x11f   :  { %v200_v54 = vadd.f32 %v198_v52, %v168_v50 }
 0x120   :  { %v201_v56 = vsel %vm169_vm3, %v157_v20, %v199_v51 }
 0x121   :  { %v202_v57 = vsel %vm170_vm4, %v163_v21, %v200_v54  ;;  %v205_v58 = vmul.f32 %v203_v53, %v201_v56 }
 0x122   :  { %v206_v60 = vmul.f32 %v204_v55, %v202_v57 }
 0x123   :  { %v207_v62 = vadd.f32 %v257_v59, %v205_v58 }
 0x124   :  { %v208_v63 = vadd.f32 %v259_v61, %v206_v60 }
 0x125   :  { %209 = vst [vmem:[#allocation8] sm:$0xff] %v207_v62 }
 0x126   :  { %210 = vst [vmem:[#allocation8 + $0x8] sm:$0xff] %v208_v63 }
 0x127   :  { %331 = shalt.err (!%p328_p5)
}
 0x128   :  { %222 = dma.vmem_to_hbm [thread:$0]  %s217_s7, 256, %s408_s4, [#allocation4], %s350_s25, %s350_s25, %s351_s26  }
 0x129   :  { %344 = dma.done.wait [#allocation4], 256  }
 0x12a   :  { %345 = vsyncadd [#allocation4], 4294967040 }
 0x12b   :  { %226 = vsyncpa [#allocation3], 1 }
 0x12c   :  { %227 = vsyncpa [#allocation6], 1 }
 0x12d   :  { %228 = vsyncpa [#allocation4], 1 }

</bundles_post_ra>
